<compile_context>
chip_gen: v7x
topology: tpu7x:2x2x1
jax: 0.10.0
libtpu: 0.0.40
codegen_flags: <defaults>
</compile_context>

<pallas_src>
import functools

import jax
import jax.numpy as jnp
from jax.experimental import pallas as pl
from jax.experimental.pallas import tpu as pltpu


def _round_up(x, m):
    return (x + m - 1) // m * m


def _mlp_critic_kernel(obs_ref, w1t_ref, b1_ref, w2t_ref, b2_ref, w3r_ref,
                       b3_ref, out_ref):
    """One batch tile, whole MLP fused in VMEM (batch on lanes).

    obs_ref : (tile, ob_dim)
    w1t     : (h1, ob_dim)    b1: (h1, 1)
    w2t     : (h2, h1)        b2: (h2, 1)
    w3r     : (1, h2)         b3: (1, 1)
    out_ref : (1, tile)       lane-dense value row for this tile
    """
    x = obs_ref[...].astype(w1t_ref.dtype)               # (tile, ob_dim)

    # Layer 1: h1^T = tanh(W1^T obs^T + b1).  Contract both last dims so the
    # MXU emits (h1, tile) directly -- no explicit obs transpose needed.
    h1 = jnp.tanh(
        jax.lax.dot_general(w1t_ref[...], x,
                            dimension_numbers=(((1,), (1,)), ((), ())),
                            preferred_element_type=jnp.float32)
        + b1_ref[...])                                    # (h1, tile), f32

    # Layer 2: h2^T = tanh(W2^T h1^T + b2).
    h2 = jnp.tanh(
        jnp.dot(w2t_ref[...], h1.astype(w2t_ref.dtype),
                preferred_element_type=jnp.float32)
        + b2_ref[...])                                    # (h2, tile), f32

    # Output layer (out_features == 1): (1, h2) @ (h2, tile) -> lane-dense
    # (1, tile) row, stored directly (no XLU transpose, unmasked stores).
    v = jnp.dot(w3r_ref[...], h2,
                preferred_element_type=jnp.float32) + b3_ref[...]
    out_ref[...] = v.astype(out_ref.dtype)


def _choose_tile(batch, batch_tile, granule):
    """Pick the rows-per-grid-step batch tile."""
    # Requested tile, clamped to the batch, rounded to the sublane granule.
    tile = max(granule,
               min(_round_up(batch_tile, granule), _round_up(batch, granule)))
    # If one tile would cover a large batch, split in two so the "parallel"
    # grid axis can shard across v7x's two TensorCores.
    if batch >= 256 and tile >= batch:
        tile = pl.cdiv(batch, 2)
    # Lane-align: the output block's last dim is `tile`; a multiple of 128
    # gives unmasked vector stores and is required once the grid has >1 step.
    if batch >= 128 or tile < batch:
        tile = _round_up(tile, 128)
    return tile


@functools.partial(jax.jit, static_argnames=("batch_tile",))
def mlp_critic_forward(obs, w1, b1, w2, b2, w3, b3, *, batch_tile=4096):
    """Fused MLP critic forward.  obs: [B, ob_dim] -> f32 values [B]."""
    B, ob_dim = obs.shape
    h1d = w1.shape[1]
    h2d = w2.shape[1]

    # Sublane packing granule of the obs dtype (f32: 8, bf16: 16, 8-bit: 32).
    granule = max(8, 8 * (4 // obs.dtype.itemsize))
    tile = _choose_tile(B, batch_tile, granule)
    num_tiles = pl.cdiv(B, tile)
    b_pad = num_tiles * tile

    # Tiny weight prep (batch-on-lanes orientation).  Biases stay f32 and are
    # added to f32 accumulators; the final layer stays f32 end to end.
    w1t = jnp.transpose(w1)                               # (h1, ob_dim)
    w2t = jnp.transpose(w2)                               # (h2, h1)
    b1c = b1.reshape(h1d, 1).astype(jnp.float32)
    b2c = b2.reshape(h2d, 1).astype(jnp.float32)
    w3r = w3.reshape(1, h2d).astype(jnp.float32)
    b3c = b3.reshape(1, 1).astype(jnp.float32)

    # TODO(synk): for very large B a feature-major (ob_dim, B) obs layout from
    # the caller would avoid the 16->128 lane padding of the obs tile in VMEM.
    out = pl.pallas_call(
        _mlp_critic_kernel,
        out_shape=jax.ShapeDtypeStruct((1, b_pad), jnp.float32),
        grid=(num_tiles,),
        in_specs=[
            # obs: tile over batch rows, full feature dim.  The last tile may
            # overrun B; Pallas boundary masking makes that harmless.
            pl.BlockSpec((tile, ob_dim), lambda i: (i, 0)),
            # Weights / biases: constant-index full blocks (~20 KB total,
            # VMEM-resident across grid steps).
            pl.BlockSpec((h1d, ob_dim), lambda i: (0, 0)),
            pl.BlockSpec((h1d, 1), lambda i: (0, 0)),
            pl.BlockSpec((h2d, h1d), lambda i: (0, 0)),
            pl.BlockSpec((h2d, 1), lambda i: (0, 0)),
            pl.BlockSpec((1, h2d), lambda i: (0, 0)),
            pl.BlockSpec((1, 1), lambda i: (0, 0)),
        ],
        # Lane-dense (1, tile) output row per grid step.
        out_specs=pl.BlockSpec((1, tile), lambda i: (0, i)),
        compiler_params=pltpu.CompilerParams(
            dimension_semantics=("parallel",),   # megacore-shardable on v7x
        ),
    )(obs, w1t, b1c, w2t, b2c, w3r, b3c)

    # (1, b_pad) -> [B]   (drops the padded tail lanes; tiny slice)
    return out[0, :B]


def init_params(key, ob_dim, hidden_sizes):
    """Deterministic synthetic parameters for the [ob_dim] + hidden + [1] MLP."""
    sizes = [ob_dim] + list(hidden_sizes) + [1]
    params = []
    keys = jax.random.split(key, len(sizes) - 1)
    for k, (fan_in, fan_out) in zip(keys, zip(sizes[:-1], sizes[1:])):
        kw, kb = jax.random.split(k)
        bound = 1.0 / float(fan_in) ** 0.5
        w = jax.random.uniform(kw, (fan_in, fan_out), jnp.float32, -bound, bound)
        b = jax.random.uniform(kb, (1, fan_out), jnp.float32, -bound, bound)
        params.extend([w, b])
    return params


def reference_forward(obs, w1, b1, w2, b2, w3, b3):
    h = jnp.tanh(obs @ w1 + b1)
    h = jnp.tanh(h @ w2 + b2)
    return jnp.squeeze(h @ w3 + b3, -1)


if __name__ == "__main__":
    key = jax.random.PRNGKey(0)
    k_obs, k_obs2, k_param = jax.random.split(key, 3)

    ob_dim = 16
    hidden_sizes = (64, 64)
    w1, b1, w2, b2, w3, b3 = init_params(k_param, ob_dim, hidden_sizes)

    # 1) Tiny batch (B=20): single sub-128 tile, full-dim output block.
    obs_small = jax.random.normal(k_obs, (20, ob_dim), jnp.float32)
    ref_small = reference_forward(obs_small, w1, b1, w2, b2, w3, b3)
    v_small = jax.block_until_ready(
        mlp_critic_forward(obs_small, w1, b1, w2, b2, w3, b3))
    assert v_small.shape == (20,)
    assert jnp.allclose(v_small, ref_small, atol=1e-5, rtol=1e-5)

    # 2) B=300 with 128-row tiles: multi-step "parallel" grid, lane-aligned
    #    tiles, ragged last tile handled by boundary masking (no jnp.pad).
    obs_med = jax.random.normal(k_obs2, (300, ob_dim), jnp.float32)
    ref_med = reference_forward(obs_med, w1, b1, w2, b2, w3, b3)
    v_med = jax.block_until_ready(
        mlp_critic_forward(obs_med, w1, b1, w2, b2, w3, b3, batch_tile=128))
    assert v_med.shape == (300,)
    assert jnp.allclose(v_med, ref_med, atol=1e-5, rtol=1e-5)

    # 3) bf16 obs / hidden weights (v6e/v7x DMA-byte saver); accumulation,
    #    tanh and the output layer stay f32.  Exercises the 16-row granule
    #    and the v7x 2-tile split of the default tile choice.
    v_bf16 = jax.block_until_ready(
        mlp_critic_forward(obs_med.astype(jnp.bfloat16),
                           w1.astype(jnp.bfloat16), b1,
                           w2.astype(jnp.bfloat16), b2, w3, b3))
    assert v_bf16.shape == (300,)
    assert jnp.allclose(v_bf16, ref_med, atol=5e-2, rtol=5e-2)

    print("KERNEL_OK")
</pallas_src>

<mosaic_0001>
module attributes {stable_mosaic.version = 11 : i64} {
  func.func @_mlp_critic_kernel(%arg0: i32, %arg1: memref<24x16xf32, #tpu.memory_space<vmem>>, %arg2: memref<64x16xf32, #tpu.memory_space<vmem>>, %arg3: memref<64x1xf32, #tpu.memory_space<vmem>>, %arg4: memref<64x64xf32, #tpu.memory_space<vmem>>, %arg5: memref<64x1xf32, #tpu.memory_space<vmem>>, %arg6: memref<1x64xf32, #tpu.memory_space<vmem>>, %arg7: memref<1x1xf32, #tpu.memory_space<vmem>>, %arg8: memref<1x24xf32, #tpu.memory_space<vmem>>) attributes {dimension_semantics = [#tpu.dimension_semantics<parallel>], iteration_bounds = array<i64: 1>, scalar_prefetch = 0 : i64, scratch_operands = 0 : i64, tpu.core_type = #tpu.core_type<tc>, window_params = [{transform_indices = @transform_0, window_bounds = array<i64: 24, 16>}, {pipeline_mode = #tpu.pipeline_mode<synchronous>, transform_indices = @transform_1, window_bounds = array<i64: 64, 16>}, {pipeline_mode = #tpu.pipeline_mode<synchronous>, transform_indices = @transform_2, window_bounds = array<i64: 64, 1>}, {pipeline_mode = #tpu.pipeline_mode<synchronous>, transform_indices = @transform_3, window_bounds = array<i64: 64, 64>}, {pipeline_mode = #tpu.pipeline_mode<synchronous>, transform_indices = @transform_4, window_bounds = array<i64: 64, 1>}, {pipeline_mode = #tpu.pipeline_mode<synchronous>, transform_indices = @transform_5, window_bounds = array<i64: 1, 64>}, {pipeline_mode = #tpu.pipeline_mode<synchronous>, transform_indices = @transform_6, window_bounds = array<i64: 1, 1>}, {transform_indices = @transform_7, window_bounds = array<i64: 1, 24>}]} {
    %c0 = arith.constant 0 : index
    %c0_0 = arith.constant 0 : index
    %0 = vector.load %arg1[%c0, %c0_0] : memref<24x16xf32, #tpu.memory_space<vmem>>, vector<24x16xf32>
    %c0_1 = arith.constant 0 : index
    %c0_2 = arith.constant 0 : index
    %1 = vector.load %arg2[%c0_1, %c0_2] : memref<64x16xf32, #tpu.memory_space<vmem>>, vector<64x16xf32>
    %cst = arith.constant dense<0.000000e+00> : vector<64x24xf32>
    %2 = tpu.matmul %1, %0, %cst {dimension_numbers = #tpu.dot_dimension_numbers<[1], [1], [0], [0], [0, 0, 1, 0], [], []>} : vector<64x16xf32>, vector<24x16xf32>, vector<64x24xf32> -> vector<64x24xf32>
    %c0_3 = arith.constant 0 : index
    %c0_4 = arith.constant 0 : index
    %3 = vector.load %arg3[%c0_3, %c0_4] : memref<64x1xf32, #tpu.memory_space<vmem>>, vector<64x1xf32>
    %4 = vector.broadcast %3 : vector<64x1xf32> to vector<64x24xf32>
    %5 = arith.addf %2, %4 : vector<64x24xf32>
    %6 = math.tanh %5 : vector<64x24xf32>
    %c0_5 = arith.constant 0 : index
    %c0_6 = arith.constant 0 : index
    %7 = vector.load %arg4[%c0_5, %c0_6] : memref<64x64xf32, #tpu.memory_space<vmem>>, vector<64x64xf32>
    %cst_7 = arith.constant dense<0.000000e+00> : vector<64x24xf32>
    %8 = tpu.matmul %7, %6, %cst_7 {dimension_numbers = #tpu.dot_dimension_numbers<[1], [0], [0], [1], [0, 0, 1, 1], [], []>} : vector<64x64xf32>, vector<64x24xf32>, vector<64x24xf32> -> vector<64x24xf32>
    %c0_8 = arith.constant 0 : index
    %c0_9 = arith.constant 0 : index
    %9 = vector.load %arg5[%c0_8, %c0_9] : memref<64x1xf32, #tpu.memory_space<vmem>>, vector<64x1xf32>
    %10 = vector.broadcast %9 : vector<64x1xf32> to vector<64x24xf32>
    %11 = arith.addf %8, %10 : vector<64x24xf32>
    %12 = math.tanh %11 : vector<64x24xf32>
    %c0_10 = arith.constant 0 : index
    %c0_11 = arith.constant 0 : index
    %13 = vector.load %arg6[%c0_10, %c0_11] : memref<1x64xf32, #tpu.memory_space<vmem>>, vector<1x64xf32>
    %cst_12 = arith.constant dense<0.000000e+00> : vector<1x24xf32>
    %14 = tpu.matmul %13, %12, %cst_12 {dimension_numbers = #tpu.dot_dimension_numbers<[1], [0], [0], [1], [0, 0, 1, 1], [], []>} : vector<1x64xf32>, vector<64x24xf32>, vector<1x24xf32> -> vector<1x24xf32>
    %c0_13 = arith.constant 0 : index
    %c0_14 = arith.constant 0 : index
    %15 = vector.load %arg7[%c0_13, %c0_14] : memref<1x1xf32, #tpu.memory_space<vmem>>, vector<1x1xf32>
    %16 = vector.broadcast %15 : vector<1x1xf32> to vector<1x24xf32>
    %17 = arith.addf %14, %16 : vector<1x24xf32>
    %c0_15 = arith.constant 0 : index
    %c0_16 = arith.constant 0 : index
    %18 = vector.load %arg8[%c0_15, %c0_16] : memref<1x24xf32, #tpu.memory_space<vmem>>, vector<1x24xf32>
    tpu.vector_store %arg8[%c0_15, %c0_16], %17 {strides = array<i32>} : memref<1x24xf32, #tpu.memory_space<vmem>>, vector<1x24xf32>,
    return
  }
  func.func @transform_0(%arg0: i32) -> (i32, i32) {
    %c0_i32 = arith.constant 0 : i32
    %c0_i32_0 = arith.constant 0 : i32
    return %arg0, %c0_i32 : i32, i32
  }
  func.func @transform_1(%arg0: i32) -> (i32, i32) {
    %c0_i32 = arith.constant 0 : i32
    %c0_i32_0 = arith.constant 0 : i32
    %c0_i32_1 = arith.constant 0 : i32
    return %c0_i32, %c0_i32_0 : i32, i32
  }
  func.func @transform_2(%arg0: i32) -> (i32, i32) {
    %c0_i32 = arith.constant 0 : i32
    %c0_i32_0 = arith.constant 0 : i32
    %c0_i32_1 = arith.constant 0 : i32
    return %c0_i32, %c0_i32_0 : i32, i32
  }
  func.func @transform_3(%arg0: i32) -> (i32, i32) {
    %c0_i32 = arith.constant 0 : i32
    %c0_i32_0 = arith.constant 0 : i32
    %c0_i32_1 = arith.constant 0 : i32
    return %c0_i32, %c0_i32_0 : i32, i32
  }
  func.func @transform_4(%arg0: i32) -> (i32, i32) {
    %c0_i32 = arith.constant 0 : i32
    %c0_i32_0 = arith.constant 0 : i32
    %c0_i32_1 = arith.constant 0 : i32
    return %c0_i32, %c0_i32_0 : i32, i32
  }
  func.func @transform_5(%arg0: i32) -> (i32, i32) {
    %c0_i32 = arith.constant 0 : i32
    %c0_i32_0 = arith.constant 0 : i32
    %c0_i32_1 = arith.constant 0 : i32
    return %c0_i32, %c0_i32_0 : i32, i32
  }
  func.func @transform_6(%arg0: i32) -> (i32, i32) {
    %c0_i32 = arith.constant 0 : i32
    %c0_i32_0 = arith.constant 0 : i32
    %c0_i32_1 = arith.constant 0 : i32
    return %c0_i32, %c0_i32_0 : i32, i32
  }
  func.func @transform_7(%arg0: i32) -> (i32, i32) {
    %c0_i32 = arith.constant 0 : i32
    %c0_i32_0 = arith.constant 0 : i32
    return %c0_i32, %arg0 : i32, i32
  }
}

</mosaic_0001>

<bundles_post_ra>
// kernel: mlp_critic_forward.1
= control target key start
LH: loop header
LB: loop body
LE: loop exit
PB: predicated region body
PF: predicated region fallthrough
CT: control target
= control target key end

     0   :  { %vm87_vm0 = vcmask 130048   ;;  %v711_v2 = vmov 0   ;;  %vm290_vm2 = vcmask 523264   ;;  %vm713_vm3 = vmmov 0   ;;  %s890_s0 = inlined_call_operand.vmem [shape: f32[20,16], index: 0, kind: input, shape index: {}]   ;;  %s891_s1 = inlined_call_operand.vmem [shape: f32[64,16], index: 1, kind: input, shape index: {}]   ;;  %s892_s6 = inlined_call_operand.<no memory space> [shape: f32[1,1], index: 6, kind: input, shape index: {}]   ;;  %s893_s2 = inlined_call_operand.vmem [shape: f32[64,1], index: 2, kind: input, shape index: {}]   ;;  %s894_s4 = inlined_call_operand.vmem [shape: f32[64,1], index: 4, kind: input, shape index: {}]   ;;  %s895_s3 = inlined_call_operand.vmem [shape: f32[64,64], index: 3, kind: input, shape index: {}]   ;;  %s896_s5 = inlined_call_operand.vmem [shape: f32[1,64], index: 5, kind: input, shape index: {}]   ;;  %s897_s7 = inlined_call_operand.vmem [shape: f32[1,24], index: 7, kind: output, shape index: {}]  }
   0x1   :  { %v28_v0 = vld [vmem:[%s890_s0] sm:$0xff]  ;;  %v29_v1 = vld [vmem:[%s890_s0 + $0x8] sm:$0xff]  ;;  %vm640_vm1 = vmpackc.low %vm87_vm0, %vm87_vm0  ;;  %677 = vset.pattern.permute.xlu0 %v711_v2  ;;  %678 = vset.pattern.permute.xlu1 %v711_v2  ;;  %v12_v3 = vstv %s892_s6  ;;  %vm512_vm4 = vcmask 188416  }
   0x2   :  { %v639_v4 = vpack.c.bf16 %v29_v1, %v28_v0  ;;  %v31_v5 = vld [vmem:[%s891_s1] sm:$0xff]  ;;  %13 = vst [vmem:[#allocation2] sm:$0x1] %v12_v3  ;;  %v30_v6 = vld [vmem:[%s890_s0 + $0x10] sm:$0xff]  ;;  %v40_v9 = vld [vmem:[%s893_s2 + $0x8] sm:$0xff] }
   0x3   :  { %580 = vmatprep.mubr.msk.f32.mxu0 %vm87_vm0, %v31_v5  ;;  %v39_v7 = vld [vmem:[%s893_s2] sm:$0xff]  ;;  %v41_v8 = vld [vmem:[%s893_s2 + $0x10] sm:$0xff]  ;;  %v42_v10 = vld [vmem:[%s893_s2 + $0x18] sm:$0xff] }
   0x4   :  { %641 = vmatprep.subr.msk.bf16.mxu0 %vm640_vm1, %v639_v4  ;;  %49 = vperm.xlu0 %677, %v39_v7   ;;  %v43_v11 = vld [vmem:[%s893_s2 + $0x20] sm:$0xff]  ;;  %v44_v12 = vld [vmem:[%s893_s2 + $0x28] sm:$0xff]  ;;  %v33_v14 = vld [vmem:[%s891_s1 + $0x10] sm:$0xff] }
   0x5   :  { %644 = vmatpush3.bf16.xpose.msk.msra.mxu0 %vm640_vm1, %v639_v4  ;;  %59 = vperm.xlu1 %678, %v41_v8   ;;  %v32_v13 = vld [vmem:[%s891_s1 + $0x8] sm:$0xff]  ;;  %v45_v15 = vld [vmem:[%s893_s2 + $0x30] sm:$0xff]  ;;  %v46_v16 = vld [vmem:[%s893_s2 + $0x38] sm:$0xff] }
   0x6   :  { %578 = vmatprep.subr.msk.mxu0 %vm87_vm0, %v30_v6  ;;  %v34_v17 = vld [vmem:[%s891_s1 + $0x18] sm:$0xff]  ;;  %v35_v18 = vld [vmem:[%s891_s1 + $0x20] sm:$0xff]  ;;  %v243_v20 = vld [vmem:[%s894_s4 + $0x8] sm:$0xff] }
   0x7   :  { %v242_v19 = vld [vmem:[%s894_s4] sm:$0xff]  ;;  %v36_v21 = vld [vmem:[%s891_s1 + $0x28] sm:$0xff]  ;;  %v37_v22 = vld [vmem:[%s891_s1 + $0x30] sm:$0xff] }
   0x8   :  { %54 = vperm.xlu0 %677, %v40_v9   ;;  %v244_v23 = vld [vmem:[%s894_s4 + $0x10] sm:$0xff]  ;;  %v245_v24 = vld [vmem:[%s894_s4 + $0x18] sm:$0xff]  ;;  %v246_v26 = vld [vmem:[%s894_s4 + $0x20] sm:$0xff] }
   0x9   :  { %64 = vperm.xlu1 %678, %v42_v10   ;;  %v38_v25 = vld [vmem:[%s891_s1 + $0x38] sm:$0xff]  ;;  %v247_v27 = vld [vmem:[%s894_s4 + $0x28] sm:$0xff]  ;;  %v248_v28 = vld [vmem:[%s894_s4 + $0x30] sm:$0xff] }
   0xa   :  { %v249_v29 = vld [vmem:[%s894_s4 + $0x38] sm:$0xff]  ;;  %v429_v30 = vld [vmem:[#allocation2] sm:$0x1]  ;;  %v235_v4 = vld [vmem:[%s895_s3 + $0x8] sm:$0xff] }
   0xb   :  { %v234_v31 = vld [vmem:[%s895_s3] sm:$0xff]  ;;  %v236_v5 = vld [vmem:[%s895_s3 + $0x10] sm:$0xff]  ;;  %v239_v8 = vld [vmem:[%s895_s3 + $0x28] sm:$0xff] }
   0xc   :  { %69 = vperm.xlu0 %677, %v43_v11   ;;  %608 = vmatprep.mubr.msk.f32.mxu1 %vm290_vm2, %v234_v31  ;;  %v238_v7 = vld [vmem:[%s895_s3 + $0x20] sm:$0xff]  ;;  %v240_v9 = vld [vmem:[%s895_s3 + $0x30] sm:$0xff]  ;;  %v241_v10 = vld [vmem:[%s895_s3 + $0x38] sm:$0xff]  ;;  %v712_v11 = vmov 0.0|0.0  }
   0xd   :  { %579 = vmatpush3.xpose.msk.msra.mxu0 %vm87_vm0, %v30_v6  ;;  %74 = vperm.xlu1 %678, %v44_v12   ;;  %v237_v6 = vld [vmem:[%s895_s3 + $0x18] sm:$0xff]  ;;  %v714_v12 = vmov 0.0  }
   0xe   :  { %661 = vmatprep.subr.bf16.mxu0 %v712_v11 }
  0x10   :  { %581 = vmatmul.mubr.msk.f32.vlgmr.msra.gmra.mrb[0].mxu0 %vm87_vm0, %v32_v13  ;;  %79 = vperm.xlu0 %677, %v45_v15  }
  0x11   :  { %583 = vmatprep.mubr.msk.f32.mxu0 %vm87_vm0, %v33_v14  ;;  %84 = vperm.xlu1 %678, %v46_v16  }
  0x14   :  { %584 = vmatmul.mubr.msk.f32.gmra.mrb[2].mxu0 %vm87_vm0, %v34_v17  ;;  %252 = vperm.xlu0 %677, %v242_v19  }
  0x15   :  { %586 = vmatprep.mubr.msk.f32.mxu0 %vm87_vm0, %v35_v18  ;;  %257 = vperm.xlu1 %678, %v243_v20  }
  0x18   :  { %587 = vmatmul.mubr.msk.f32.gmra.mrb[4].mxu0 %vm87_vm0, %v36_v21  ;;  %262 = vperm.xlu0 %677, %v244_v23  }
  0x19   :  { %589 = vmatprep.mubr.msk.f32.mxu0 %vm87_vm0, %v37_v22  ;;  %267 = vperm.xlu1 %678, %v245_v24  }
  0x1c   :  { %590 = vmatmul.mubr.msk.f32.gmra.mrb[6].mxu0 %vm87_vm0, %v38_v25  ;;  %272 = vperm.xlu0 %677, %v246_v26  }
  0x1d   :  { %277 = vperm.xlu1 %678, %v247_v27   ;;  %636 = vmatprep.mubr.msk.f32.mxu0 %vm713_vm3, %v714_v12 }
  0x20   :  { %282 = vperm.xlu0 %677, %v248_v28  }
  0x21   :  { %287 = vperm.xlu1 %678, %v249_v29  }
  0x24   :  { %432 = vperm.xlu0 %677, %v429_v30  }
  0x83   :  { %v50_v32 = vpop.permute.xlu0 %49 }
  0x84   :  { %v60_v33 = vpop.permute.xlu1 %59 }
  0x87   :  { %v55_v34 = vpop.permute.xlu0 %54 }
  0x88   :  { %v65_v35 = vpop.permute.xlu1 %64 }
  0x8b   :  { %v70_v45 = vpop.permute.xlu0 %69 }
  0x8c   :  { %v75_v43 = vpop.permute.xlu1 %74 }
  0x8f   :  { %v80_v53 = vpop.permute.xlu0 %79 }
  0x90   :  { %v85_v50 = vpop.permute.xlu1 %84 }
  0x93   :  { %v253_v14 = vpop.permute.xlu0 %252 }
  0x94   :  { %v258_v13 = vpop.permute.xlu1 %257 }
  0x97   :  { %v263_v17 = vpop.permute.xlu0 %262 }
  0x98   :  { %v268_v15 = vpop.permute.xlu1 %267 }
  0x9b   :  { %v273_v26 = vpop.permute.xlu0 %272 }
  0x9c   :  { %v278_v24 = vpop.permute.xlu1 %277 }
  0xa0   :  { %v288_v31 = vpop.permute.xlu1 %287 }
  0xe3   :  { %v582_v36 = vpop.f32.mrb[0].mxu0 }
  0xe4   :  { %v193_v37 = vadd.f32 %v582_v36, %v55_v34  ;;  %v187_v38 = vpop.f32.mrb[1].mxu0  ;;  %v283_v34 = vpop.permute.xlu0 %282 }
  0xe5   :  { %v188_v39 = vadd.f32 %v187_v38, %v50_v32 }
  0xe6   :  { %679 = vtanh.f32 %v193_v37 }
  0xe7   :  { %681 = vtanh.f32 %v188_v39  ;;  %v585_v40 = vpop.f32.mrb[2].mxu0 }
  0xe8   :  { %v203_v41 = vadd.f32 %v585_v40, %v65_v35  ;;  %v197_v42 = vpop.f32.mrb[3].mxu0 }
  0xe9   :  { %v198_v44 = vadd.f32 %v197_v42, %v60_v33 }
  0xea   :  { %683 = vtanh.f32 %v203_v41 }
  0xeb   :  { %685 = vtanh.f32 %v198_v44  ;;  %v588_v46 = vpop.f32.mrb[4].mxu0 }
  0xec   :  { %v213_v47 = vadd.f32 %v588_v46, %v75_v43  ;;  %v207_v48 = vpop.f32.mrb[5].mxu0 }
  0xed   :  { %v208_v49 = vadd.f32 %v207_v48, %v70_v45 }
  0xee   :  { %687 = vtanh.f32 %v213_v47 }
  0xef   :  { %689 = vtanh.f32 %v208_v49  ;;  %v591_v51 = vpop.f32.mrb[6].mxu0  ;;  %v428_v49 = vld [vmem:[%s896_s5] sm:$0x1] }
  0xf0   :  { %v680_v52 = vpop.eup %679  ;;  %v223_v54 = vadd.f32 %v591_v51, %v85_v50  ;;  %v217_v55 = vpop.f32.mrb[7].mxu0  ;;  %v435_v50 = vlaneseq }
  0xf1   :  { %v682_v56 = vpop.eup %681  ;;  %v218_v57 = vadd.f32 %v217_v55, %v80_v53  ;;  %v433_v53 = vpop.permute.xlu0 %432 }
  0xf2   :  { %691 = vtanh.f32 %v223_v54  ;;  %v645_v58 = vpack.c.bf16 %v680_v52, %v682_v56  ;;  %v436_v51 = vshrl.u32 %v435_v50, 7 }
  0xf3   :  { %693 = vtanh.f32 %v218_v57 }
  0xf4   :  { %v684_v59 = vpop.eup %683  ;;  %646 = vmatprep.subr.bf16.mxu1 %v645_v58  ;;  %v437_v52 = vsub.s32 0, %v436_v51 }
  0xf5   :  { %v686_v60 = vpop.eup %685  ;;  %648 = vmatpush3.bf16.msra.mxu1 %v645_v58 }
  0xf6   :  { %v649_v61 = vpack.c.bf16 %v684_v59, %v686_v60  ;;  %v438_v54 = vrot.slane %v433_v53, %v437_v52 }
  0xf8   :  { %v688_v62 = vpop.eup %687  ;;  %650 = vmatprep.subr.bf16.mxu1 %v649_v61 }
  0xf9   :  { %v690_v63 = vpop.eup %689  ;;  %652 = vmatpush3.bf16.msra.mxu1 %v649_v61 }
  0xfa   :  { %v653_v0 = vpack.c.bf16 %v688_v62, %v690_v63 }
  0xfc   :  { %v692_v1 = vpop.eup %691  ;;  %654 = vmatprep.subr.bf16.mxu1 %v653_v0 }
  0xfd   :  { %v694_v2 = vpop.eup %693  ;;  %656 = vmatpush3.bf16.msra.mxu1 %v653_v0 }
  0xfe   :  { %v657_v3 = vpack.c.bf16 %v692_v1, %v694_v2 }
 0x100   :  { %658 = vmatprep.subr.bf16.mxu1 %v657_v3 }
 0x101   :  { %660 = vmatpush3.bf16.msra.mxu1 %v657_v3 }
 0x104   :  { %609 = vmatmul.mubr.msk.f32.vlgmr.msra.gmra.mrb[0].mxu1 %vm290_vm2, %v235_v4 }
 0x105   :  { %611 = vmatprep.mubr.msk.f32.mxu1 %vm290_vm2, %v236_v5 }
 0x108   :  { %612 = vmatmul.mubr.msk.f32.gmra.mrb[2].mxu1 %vm290_vm2, %v237_v6 }
 0x109   :  { %614 = vmatprep.mubr.msk.f32.mxu1 %vm290_vm2, %v238_v7 }
 0x10c   :  { %615 = vmatmul.mubr.msk.f32.gmra.mrb[4].mxu1 %vm290_vm2, %v239_v8 }
 0x10d   :  { %617 = vmatprep.mubr.msk.f32.mxu1 %vm290_vm2, %v240_v9 }
 0x110   :  { %618 = vmatmul.mubr.msk.f32.gmra.mrb[6].mxu1 %vm290_vm2, %v241_v10 }
 0x1d7   :  { %v610_v16 = vpop.f32.mrb[0].mxu1 }
 0x1d8   :  { %v387_v18 = vadd.f32 %v610_v16, %v258_v13  ;;  %v381_v19 = vpop.f32.mrb[1].mxu1 }
 0x1d9   :  { %v382_v20 = vadd.f32 %v381_v19, %v253_v14 }
 0x1da   :  { %695 = vtanh.f32 %v387_v18 }
 0x1db   :  { %697 = vtanh.f32 %v382_v20  ;;  %v613_v21 = vpop.f32.mrb[2].mxu1 }
 0x1dc   :  { %v397_v22 = vadd.f32 %v613_v21, %v268_v15  ;;  %v391_v23 = vpop.f32.mrb[3].mxu1 }
 0x1dd   :  { %v392_v25 = vadd.f32 %v391_v23, %v263_v17 }
 0x1de   :  { %699 = vtanh.f32 %v397_v22 }
 0x1df   :  { %701 = vtanh.f32 %v392_v25  ;;  %v616_v27 = vpop.f32.mrb[4].mxu1 }
 0x1e0   :  { %v407_v28 = vadd.f32 %v616_v27, %v278_v24  ;;  %v401_v29 = vpop.f32.mrb[5].mxu1 }
 0x1e1   :  { %v402_v30 = vadd.f32 %v401_v29, %v273_v26 }
 0x1e2   :  { %703 = vtanh.f32 %v407_v28 }
 0x1e3   :  { %705 = vtanh.f32 %v402_v30  ;;  %v619_v32 = vpop.f32.mrb[6].mxu1 }
 0x1e4   :  { %v696_v33 = vpop.eup %695  ;;  %v417_v35 = vadd.f32 %v619_v32, %v288_v31  ;;  %v411_v36 = vpop.f32.mrb[7].mxu1 }
 0x1e5   :  { %v698_v37 = vpop.eup %697  ;;  %v412_v38 = vadd.f32 %v411_v36, %v283_v34 }
 0x1e6   :  { %707 = vtanh.f32 %v417_v35  ;;  %v662_v39 = vpack.c.bf16 %v696_v33, %v698_v37 }
 0x1e7   :  { %709 = vtanh.f32 %v412_v38 }
 0x1e8   :  { %v700_v40 = vpop.eup %699  ;;  %663 = vmatpush3.bf16.msra.mxu0 %v662_v39 }
 0x1e9   :  { %v702_v41 = vpop.eup %701  ;;  %664 = vmatprep.subr.bf16.mxu0 %v712_v11 }
 0x1ea   :  { %v665_v42 = vpack.c.bf16 %v700_v40, %v702_v41 }
 0x1ec   :  { %v704_v43 = vpop.eup %703  ;;  %666 = vmatpush3.bf16.msra.mxu0 %v665_v42 }
 0x1ed   :  { %v706_v44 = vpop.eup %705  ;;  %667 = vmatprep.subr.bf16.mxu0 %v712_v11 }
 0x1ee   :  { %v668_v45 = vpack.c.bf16 %v704_v43, %v706_v44 }
 0x1f0   :  { %v708_v46 = vpop.eup %707  ;;  %669 = vmatpush3.bf16.msra.mxu0 %v668_v45 }
 0x1f1   :  { %v710_v47 = vpop.eup %709  ;;  %670 = vmatprep.subr.bf16.mxu0 %v712_v11 }
 0x1f2   :  { %v671_v48 = vpack.c.bf16 %v708_v46, %v710_v47 }
 0x1f4   :  { %672 = vmatpush3.bf16.msra.mxu0 %v671_v48 }
 0x1f7   :  { %637 = vmatmul.mubr.msk.f32.vlgmr.msra.gmra.mrb[8].mxu0 %vm290_vm2, %v428_v49 }
 0x2ca   :  { %v508_v55 = vpop.f32.mrb[8].mxu0 }
 0x2cb   :  { %v509_v56 = vadd.f32 %v508_v55, %v438_v54  ;;  %v638_v57 = vpop.f32.mrb[9].mxu0 }
 0x2cd   :  { %513 = vst.msk [vmem:[%s897_s7] sm:$0x1] %vm512_vm4, %v509_v56 }

</bundles_post_ra>
